<compile_context>
chip_gen: v5e
topology: v5e:2x2
jax: 0.10.0
libtpu: 0.0.40
codegen_flags: <defaults>
</compile_context>

<pallas_src>
import jax
import jax.numpy as jnp
import numpy as np
from jax.experimental import pallas as pl
from jax.experimental.pallas import tpu as pltpu


def _identity_kernel(x_ref, o_ref):
    # Pure pass-through of the current VMEM tile.
    o_ref[...] = x_ref[...]


_LANE = 128
_TARGET_BLOCK_BYTES = 2 * 1024 * 1024  # ~2 MiB per block (≈8 MiB live VMEM)


def _sublane_granularity(dtype) -> int:
    """Rows per fully-packed vreg for this dtype (8 f32, 16 bf16, 32 int8)."""
    itemsize = jnp.dtype(dtype).itemsize
    return max(8, 32 // max(1, itemsize))


def _lane_dense_view(n_elems: int):
    """Pick (R, C) with C a multiple of 128 (lane-dense) if n_elems allows."""
    if n_elems >= _LANE and n_elems % _LANE == 0:
        for c in (1024, 512, 2048, 4096, 256, 128):
            if n_elems % c == 0:
                return n_elems // c, c
    return None


def dummy_module_forward(x: jax.Array, *, min_bytes_for_pallas: int = 256 * 1024) -> jax.Array:
    """Identity forward pass of DummyModule, executed as a Pallas TPU kernel.

    NOTE: the input buffer is donated/aliased into the output when the Pallas
    path is taken; do not rely on reusing the exact input device buffer after
    this call (semantically the returned value equals the input).
    """
    orig_shape = x.shape
    orig_dtype = x.dtype
    n = x.size
    itemsize = jnp.dtype(orig_dtype).itemsize

    if n == 0:
        return x

    # Small-input bypass: launch + reshape plumbing dwarf the copy itself.
    if n * itemsize < min_bytes_for_pallas:
        return x

    # --- choose a 2-D view -------------------------------------------------
    dense = _lane_dense_view(n)
    if dense is not None:
        # Lane-dense path: last dim is a multiple of 128 -> unmasked stores.
        R, C = dense
        x2 = x.reshape(R, C)
    else:
        # Fallback: keep the original last dim (block = full lane extent).
        if x.ndim <= 1:
            x2 = x.reshape(1, n)
        else:
            x2 = x.reshape(-1, x.shape[-1])
        R, C = x2.shape

    # --- choose a row tile from a byte budget ------------------------------
    gran = _sublane_granularity(orig_dtype)
    if R <= gran:
        tile_r = R  # block equals full array dim -> always legal
    else:
        rows_budget = max(1, _TARGET_BLOCK_BYTES // max(1, C * itemsize))
        tile_r = max(gran, (min(rows_budget, R) // gran) * gran)

    grid = (pl.cdiv(R, tile_r),)

    out2 = pl.pallas_call(
        _identity_kernel,
        out_shape=jax.ShapeDtypeStruct((R, C), orig_dtype),
        grid_spec=pltpu.PrefetchScalarGridSpec(
            num_scalar_prefetch=0,
            grid=grid,
            in_specs=[pl.BlockSpec((tile_r, C), lambda i: (i, 0))],
            out_specs=pl.BlockSpec((tile_r, C), lambda i: (i, 0)),
        ),
        # Identity: output aliases the (donated) input buffer — no new HBM
        # allocation, XLA may elide the copy entirely when it can donate.
        input_output_aliases={0: 0},
        compiler_params=pltpu.CompilerParams(
            dimension_semantics=("parallel",),
        ),
    )(x2)

    return out2.reshape(orig_shape)


if __name__ == "__main__":
    key = jax.random.PRNGKey(0)
    # Small NCHW-style input consistent with typical module usage.
    x = jax.random.normal(key, (2, 4, 16, 16), dtype=jnp.float32)
    # Host copy captured before the call — the input buffer may be donated
    # into the output by input_output_aliases, so compare against this.
    x_host = np.asarray(x)

    # Force the Pallas path even though the demo tensor is tiny (8 KiB).
    y = dummy_module_forward(x, min_bytes_for_pallas=0)
    jax.block_until_ready(y)

    assert y.shape == x_host.shape
    assert y.dtype == jnp.float32
    np.testing.assert_array_equal(np.asarray(y), x_host)

    # Default path: tiny inputs take the bypass (still an exact identity).
    x2 = jax.random.normal(jax.random.PRNGKey(1), (2, 4, 16, 16), jnp.float32)
    x2_host = np.asarray(x2)
    y2 = dummy_module_forward(x2)
    jax.block_until_ready(y2)
    np.testing.assert_array_equal(np.asarray(y2), x2_host)

    print("KERNEL_OK")
</pallas_src>

<mosaic_0001>
module attributes {stable_mosaic.version = 11 : i64} {
  func.func @_identity_kernel(%arg0: i32, %arg1: memref<2x1024xf32, #tpu.memory_space<vmem>>, %arg2: memref<2x1024xf32, #tpu.memory_space<vmem>>) attributes {dimension_semantics = [#tpu.dimension_semantics<parallel>], iteration_bounds = array<i64: 1>, scalar_prefetch = 0 : i64, scratch_operands = 0 : i64, tpu.core_type = #tpu.core_type<tc>, window_params = [{transform_indices = @transform_0, window_bounds = array<i64: 2, 1024>}, {transform_indices = @transform_1, window_bounds = array<i64: 2, 1024>}]} {
    %c0 = arith.constant 0 : index
    %c0_0 = arith.constant 0 : index
    %0 = vector.load %arg1[%c0, %c0_0] : memref<2x1024xf32, #tpu.memory_space<vmem>>, vector<2x1024xf32>
    %c0_1 = arith.constant 0 : index
    %c0_2 = arith.constant 0 : index
    %1 = vector.load %arg2[%c0_1, %c0_2] : memref<2x1024xf32, #tpu.memory_space<vmem>>, vector<2x1024xf32>
    tpu.vector_store %arg2[%c0_1, %c0_2], %0 {strides = array<i32>} : memref<2x1024xf32, #tpu.memory_space<vmem>>, vector<2x1024xf32>,
    return
  }
  func.func @transform_0(%arg0: i32) -> (i32, i32) {
    %c0_i32 = arith.constant 0 : i32
    %c0_i32_0 = arith.constant 0 : i32
    return %arg0, %c0_i32 : i32, i32
  }
  func.func @transform_1(%arg0: i32) -> (i32, i32) {
    %c0_i32 = arith.constant 0 : i32
    %c0_i32_0 = arith.constant 0 : i32
    return %arg0, %c0_i32 : i32, i32
  }
}

</mosaic_0001>

<bundles_post_ra>
// kernel: tpu_custom_call.1
= control target key start
LH: loop header
LB: loop body
LE: loop exit
PB: predicated region body
PF: predicated region fallthrough
CT: control target
= control target key end

     0   :  { %6 = vsyncpa [#allocation3], 0  ;;  %s116_s0 = inlined_call_operand.hbm [shape: f32[2,1024], index: 0, kind: input, shape index: {}, may-alias: {0,1}]   ;;  %s117_s1 = inlined_call_operand.hbm [shape: f32[2,1024], index: 1, kind: output, shape index: {}, may-alias: {0,1}]  }
   0x1   :  { %7 = vsyncpa [#allocation4], 0  ;;  %s13_s8 = sshll.u32 %s116_s0, 4  ;;  %s98_s9 = smov [#allocation2]   ;;  %s14_s8 = int_to_ptr.hbm [resolvable:$true] %s13_s8 }
   0x2   :  { %s15_s10 = sshll.u32 %s98_s9, 4  ;;  %s16_s10 = int_to_ptr.vmem [resolvable:$true] %s15_s10 }
   0x3   :  { %18 = dma.hbm_to_vmem [thread:$0]  %s14_s8, 256, %s16_s10, [#allocation3]  }
   0x4   :  { %94 = dma.done.wait [#allocation3], 256  }
   0x5   :  { %95 = vsyncadd [#allocation3], 4294967040  ;;  %s99_s11 = smov [#allocation5]   ;;  %s34_s15 = sshll.u32 %s117_s1, 4  ;;  %v23_v0 = vld [vmem:[#allocation2] sm:$0xff]  ;;  %v24_v1 = vld [vmem:[#allocation2 + $0x8] sm:$0xff]  ;;  %s35_s15 = int_to_ptr.hbm [resolvable:$true] %s34_s15 }
   0x6   :  { %s32_s12 = sshll.u32 %s99_s11, 4  ;;  %25 = vst [vmem:[#allocation5] sm:$0xff] %v23_v0  ;;  %s33_s12 = int_to_ptr.vmem [resolvable:$true] %s32_s12 }
   0x7   :  { %26 = vst [vmem:[#allocation5 + $0x8] sm:$0xff] %v24_v1 }
   0x8   :  { %37 = dma.vmem_to_hbm [thread:$0]  %s33_s12, 256, %s35_s15, [#allocation4]  }
   0x9   :  { %96 = dma.done.wait [#allocation4], 256  }
   0xa   :  { %97 = vsyncadd [#allocation4], 4294967040 }
   0xb   :  { %42 = vsyncpa [#allocation3], 1 }
   0xc   :  { %43 = vsyncpa [#allocation4], 1 }

</bundles_post_ra>
